<compile_context>
chip_gen: v5e
topology: v5e:2x2
jax: 0.10.0
libtpu: 0.0.40
codegen_flags: <defaults>
</compile_context>

<pallas_src>
import math

import jax
import jax.numpy as jnp
from jax.experimental import pallas as pl
from jax.experimental.pallas import tpu as pltpu

HIDDEN = 128


def critic_kernel(xt_ref, w1_ref, b1_ref, w2_ref, b2_ref, o_ref):
    # fc1 on the MXU, batch on lanes: (H, S) @ (S, TB) -> (H, TB), f32 accumulate.
    h = jnp.dot(w1_ref[...], xt_ref[...], preferred_element_type=jnp.float32)
    # Bias add broadcasts (H, 1) over lanes; read once, no explicit broadcast_to.
    h = jnp.maximum(h + b1_ref[...], 0.0)
    # fc2 (N=1): VPU multiply + sublane (axis 0) reduction instead of an MXU matmul.
    v = jnp.sum(h * w2_ref[...], axis=0, keepdims=True) + b2_ref[...]
    # Lane-dense (1, TB) store.
    o_ref[...] = v.astype(o_ref.dtype)


def _round_up(a, m):
    return ((a + m - 1) // m) * m


def critic_forward(x, params, *, block_b=1024):
    """x: (B, state_size) f32.  params in PyTorch nn.Linear layout.  Returns (B, 1)."""
    w1, b1, w2, b2 = params          # (H, S), (H,), (1, H), (1,)
    B, S = x.shape
    H = w1.shape[0]

    # Batch tile lives on lanes -> must be a multiple of 128.  Re-derive per call;
    # do not bake in a tile tuned for v6e's 128 MiB if the model grows (v7x: 64 MiB).
    tb = min(block_b, _round_up(B, 128))
    Bp = _round_up(B, tb)

    # Transpose in the wrapper so batch maps to lanes inside the kernel; pad the
    # tail tile with zeros (padded columns are sliced off below).
    xt = jnp.pad(x, ((0, Bp - B), (0, 0))).T            # (S, Bp)
    b1c = b1.reshape(H, 1).astype(jnp.float32)          # (H, 1)
    w2c = w2.reshape(H, 1).astype(jnp.float32)          # (H, 1)  == fc2.weight.T
    b2c = b2.reshape(1, 1).astype(jnp.float32)          # (1, 1)

    grid = (Bp // tb,)

    cost = pl.CostEstimate(
        flops=2 * Bp * (S * H + H),
        transcendentals=0,
        bytes_accessed=4 * (Bp * S + H * S + 2 * H + 1 + Bp),
    )

    out = pl.pallas_call(
        critic_kernel,
        out_shape=jax.ShapeDtypeStruct((1, Bp), jnp.float32),
        grid=grid,
        in_specs=[
            pl.BlockSpec((S, tb), lambda i: (0, i)),     # x tile, pipelined over batch
            pl.BlockSpec((H, S), lambda i: (0, 0)),      # W1: VMEM-resident (invariant)
            pl.BlockSpec((H, 1), lambda i: (0, 0)),      # b1
            pl.BlockSpec((H, 1), lambda i: (0, 0)),      # W2 column
            pl.BlockSpec((1, 1), lambda i: (0, 0)),      # b2
        ],
        out_specs=pl.BlockSpec((1, tb), lambda i: (0, i)),
        compiler_params=pltpu.CompilerParams(
            dimension_semantics=("parallel",),
        ),
        cost_estimate=cost,
    )(xt, w1c := w1.astype(jnp.float32), b1c, w2c, b2c)[0] if False else pl.pallas_call(
        critic_kernel,
        out_shape=jax.ShapeDtypeStruct((1, Bp), jnp.float32),
        grid=grid,
        in_specs=[
            pl.BlockSpec((S, tb), lambda i: (0, i)),
            pl.BlockSpec((H, S), lambda i: (0, 0)),
            pl.BlockSpec((H, 1), lambda i: (0, 0)),
            pl.BlockSpec((H, 1), lambda i: (0, 0)),
            pl.BlockSpec((1, 1), lambda i: (0, 0)),
        ],
        out_specs=pl.BlockSpec((1, tb), lambda i: (0, i)),
        compiler_params=pltpu.CompilerParams(dimension_semantics=("parallel",)),
        cost_estimate=cost,
    )(xt, w1.astype(jnp.float32), b1c, w2c, b2c)

    # (1, Bp) lane-dense kernel output -> (B, 1) in the PyTorch convention.
    return out.reshape(Bp, 1)[:B]


def init_params(key, state_size, hidden=HIDDEN):
    # PyTorch nn.Linear default init: U(-1/sqrt(fan_in), 1/sqrt(fan_in)), PyTorch layouts.
    k1, k2, k3, k4 = jax.random.split(key, 4)
    bound1 = 1.0 / math.sqrt(state_size)
    w1 = jax.random.uniform(k1, (hidden, state_size), jnp.float32, -bound1, bound1)
    b1 = jax.random.uniform(k2, (hidden,), jnp.float32, -bound1, bound1)
    bound2 = 1.0 / math.sqrt(hidden)
    w2 = jax.random.uniform(k3, (1, hidden), jnp.float32, -bound2, bound2)
    b2 = jax.random.uniform(k4, (1,), jnp.float32, -bound2, bound2)
    return w1, b1, w2, b2


def reference(x, params):
    w1, b1, w2, b2 = params
    h = jnp.maximum(x @ w1.T + b1[None, :], 0.0)
    return h @ w2.T + b2[None, :]


if __name__ == "__main__":
    key = jax.random.PRNGKey(0)
    kx, kp, kx2 = jax.random.split(key, 3)

    state_size = 8
    params = init_params(kp, state_size)

    # Small shape consistent with the module (rollout-sized batch).
    x = jax.random.normal(kx, (4, state_size), jnp.float32)
    out = jax.block_until_ready(critic_forward(x, params))
    assert out.shape == (4, 1)
    assert jnp.allclose(out, reference(x, params), atol=1e-5, rtol=1e-5)

    # Exercise the multi-tile grid + padded-tail path (B not a multiple of the tile).
    x2 = jax.random.normal(kx2, (300, state_size), jnp.float32)
    out2 = jax.block_until_ready(critic_forward(x2, params, block_b=128))
    assert out2.shape == (300, 1)
    assert jnp.allclose(out2, reference(x2, params), atol=1e-5, rtol=1e-5)

    print("KERNEL_OK")
</pallas_src>

<mosaic_0001>
module attributes {stable_mosaic.version = 11 : i64} {
  func.func @critic_kernel(%arg0: i32, %arg1: memref<8x128xf32, #tpu.memory_space<vmem>>, %arg2: memref<128x8xf32, #tpu.memory_space<vmem>>, %arg3: memref<128x1xf32, #tpu.memory_space<vmem>>, %arg4: memref<128x1xf32, #tpu.memory_space<vmem>>, %arg5: memref<1x1xf32, #tpu.memory_space<vmem>>, %arg6: memref<1x128xf32, #tpu.memory_space<vmem>>) attributes {dimension_semantics = [#tpu.dimension_semantics<parallel>], iteration_bounds = array<i64: 1>, scalar_prefetch = 0 : i64, scratch_operands = 0 : i64, tpu.core_type = #tpu.core_type<tc>, window_params = [{transform_indices = @transform_0, window_bounds = array<i64: 8, 128>}, {pipeline_mode = #tpu.pipeline_mode<synchronous>, transform_indices = @transform_1, window_bounds = array<i64: 128, 8>}, {pipeline_mode = #tpu.pipeline_mode<synchronous>, transform_indices = @transform_2, window_bounds = array<i64: 128, 1>}, {pipeline_mode = #tpu.pipeline_mode<synchronous>, transform_indices = @transform_3, window_bounds = array<i64: 128, 1>}, {pipeline_mode = #tpu.pipeline_mode<synchronous>, transform_indices = @transform_4, window_bounds = array<i64: 1, 1>}, {transform_indices = @transform_5, window_bounds = array<i64: 1, 128>}]} {
    %c0 = arith.constant 0 : index
    %c0_0 = arith.constant 0 : index
    %0 = vector.load %arg2[%c0, %c0_0] : memref<128x8xf32, #tpu.memory_space<vmem>>, vector<128x8xf32>
    %c0_1 = arith.constant 0 : index
    %c0_2 = arith.constant 0 : index
    %1 = vector.load %arg1[%c0_1, %c0_2] : memref<8x128xf32, #tpu.memory_space<vmem>>, vector<8x128xf32>
    %cst = arith.constant dense<0.000000e+00> : vector<128x128xf32>
    %2 = tpu.matmul %0, %1, %cst {dimension_numbers = #tpu.dot_dimension_numbers<[1], [0], [0], [1], [0, 0, 1, 1], [], []>} : vector<128x8xf32>, vector<8x128xf32>, vector<128x128xf32> -> vector<128x128xf32>
    %c0_3 = arith.constant 0 : index
    %c0_4 = arith.constant 0 : index
    %3 = vector.load %arg3[%c0_3, %c0_4] : memref<128x1xf32, #tpu.memory_space<vmem>>, vector<128x1xf32>
    %4 = vector.broadcast %3 : vector<128x1xf32> to vector<128x128xf32>
    %5 = arith.addf %2, %4 : vector<128x128xf32>
    %cst_5 = arith.constant 0.000000e+00 : f32
    %6 = vector.broadcast %cst_5 : f32 to vector<128x128xf32>
    %7 = arith.maximumf %5, %6 : vector<128x128xf32>
    %c0_6 = arith.constant 0 : index
    %c0_7 = arith.constant 0 : index
    %8 = vector.load %arg4[%c0_6, %c0_7] : memref<128x1xf32, #tpu.memory_space<vmem>>, vector<128x1xf32>
    %9 = vector.broadcast %8 : vector<128x1xf32> to vector<128x128xf32>
    %10 = arith.mulf %7, %9 : vector<128x128xf32>
    %cst_8 = arith.constant dense<0.000000e+00> : vector<128xf32>
    %11 = vector.multi_reduction <add>, %10, %cst_8 [0] : vector<128x128xf32> to vector<128xf32>
    %12 = vector.shape_cast %11 : vector<128xf32> to vector<1x128xf32>
    %c0_9 = arith.constant 0 : index
    %c0_10 = arith.constant 0 : index
    %13 = vector.load %arg5[%c0_9, %c0_10] : memref<1x1xf32, #tpu.memory_space<vmem>>, vector<1x1xf32>
    %14 = vector.broadcast %13 : vector<1x1xf32> to vector<1x128xf32>
    %15 = arith.addf %12, %14 : vector<1x128xf32>
    %c0_11 = arith.constant 0 : index
    %c0_12 = arith.constant 0 : index
    %16 = vector.load %arg6[%c0_11, %c0_12] : memref<1x128xf32, #tpu.memory_space<vmem>>, vector<1x128xf32>
    tpu.vector_store %arg6[%c0_11, %c0_12], %15 {strides = array<i32>} : memref<1x128xf32, #tpu.memory_space<vmem>>, vector<1x128xf32>,
    return
  }
  func.func @transform_0(%arg0: i32) -> (i32, i32) {
    %c0_i32 = arith.constant 0 : i32
    %c0_i32_0 = arith.constant 0 : i32
    return %c0_i32, %arg0 : i32, i32
  }
  func.func @transform_1(%arg0: i32) -> (i32, i32) {
    %c0_i32 = arith.constant 0 : i32
    %c0_i32_0 = arith.constant 0 : i32
    %c0_i32_1 = arith.constant 0 : i32
    return %c0_i32, %c0_i32_0 : i32, i32
  }
  func.func @transform_2(%arg0: i32) -> (i32, i32) {
    %c0_i32 = arith.constant 0 : i32
    %c0_i32_0 = arith.constant 0 : i32
    %c0_i32_1 = arith.constant 0 : i32
    return %c0_i32, %c0_i32_0 : i32, i32
  }
  func.func @transform_3(%arg0: i32) -> (i32, i32) {
    %c0_i32 = arith.constant 0 : i32
    %c0_i32_0 = arith.constant 0 : i32
    %c0_i32_1 = arith.constant 0 : i32
    return %c0_i32, %c0_i32_0 : i32, i32
  }
  func.func @transform_4(%arg0: i32) -> (i32, i32) {
    %c0_i32 = arith.constant 0 : i32
    %c0_i32_0 = arith.constant 0 : i32
    %c0_i32_1 = arith.constant 0 : i32
    return %c0_i32, %c0_i32_0 : i32, i32
  }
  func.func @transform_5(%arg0: i32) -> (i32, i32) {
    %c0_i32 = arith.constant 0 : i32
    %c0_i32_0 = arith.constant 0 : i32
    return %c0_i32, %arg0 : i32, i32
  }
}

</mosaic_0001>

<bundles_post_ra>
// kernel: tpu_custom_call.1
= control target key start
LH: loop header
LB: loop body
LE: loop exit
PB: predicated region body
PF: predicated region fallthrough
CT: control target
= control target key end

     0   :  { %s690_s0 = inlined_call_operand.vmem [shape: f32[8,128], index: 0, kind: input, shape index: {}]   ;;  %s691_s1 = inlined_call_operand.vmem [shape: f32[128,8], index: 1, kind: input, shape index: {}]   ;;  %s692_s2 = inlined_call_operand.vmem [shape: f32[128,1], index: 2, kind: input, shape index: {}]   ;;  %s693_s3 = inlined_call_operand.vmem [shape: f32[128,1], index: 3, kind: input, shape index: {}]   ;;  %s694_s4 = inlined_call_operand.<no memory space> [shape: f32[1,1], index: 4, kind: input, shape index: {}]   ;;  %s695_s5 = inlined_call_operand.hbm [shape: f32[1,128], index: 5, kind: output, shape index: {}]  }
   0x1   :  { %v10_v0 = vstv %s694_s4 }
   0x2   :  { %11 = vst [vmem:[#allocation2] sm:$0x1] %v10_v0 }
   0x3   :  { %v39_v1 = vld [vmem:[%s690_s0] sm:$0xff]  ;;  %v474_v2 = vmov 0   ;;  %v42_v4 = vld [vmem:[%s692_s2 + $0x10] sm:$0xff]  ;;  %vm136_vm0 = vcmask 64512   ;;  %v45_v10 = vld [vmem:[%s692_s2 + $0x28] sm:$0xff] }
   0x4   :  { %447 = vset.pattern.permute.xlu2 %v474_v2  ;;  %446 = vset.pattern.permute.xlu1 %v474_v2  ;;  %v44_v3 = vld [vmem:[%s692_s2 + $0x20] sm:$0xff]  ;;  %v43_v11 = vld [vmem:[%s692_s2 + $0x18] sm:$0xff]  ;;  %v41_v12 = vld [vmem:[%s692_s2 + $0x8] sm:$0xff] }
   0x5   :  { %445 = vset.pattern.permute.xlu0 %v474_v2  ;;  %200 = vmatpush.msra.mxu0 %v39_v1  ;;  %v40_v5 = vld [vmem:[%s692_s2] sm:$0xff]  ;;  %v24_v13 = vld [vmem:[%s691_s1 + $0x8] sm:$0xff] }
   0x6   :  { %440 = vmatpush.msra.mxu1 %v39_v1  ;;  %441 = vmatpush.msra.mxu2 %v39_v1  ;;  %v23_v6 = vld [vmem:[%s691_s1] sm:$0xff]  ;;  %v28_v14 = vld [vmem:[%s691_s1 + $0x28] sm:$0xff] }
   0x7   :  { %v27_v7 = vld [vmem:[%s691_s1 + $0x20] sm:$0xff]  ;;  %442 = vmatpush.msra.mxu3 %v39_v1  ;;  %78 = vperm.xlu2 %447, %v44_v3  }
   0x8   :  { %v31_v8 = vld [vmem:[%s691_s1 + $0x40] sm:$0xff]  ;;  %68 = vperm.xlu1 %446, %v42_v4   ;;  %58 = vperm.xlu0 %445, %v40_v5  }
   0x9   :  { %v35_v9 = vld [vmem:[%s691_s1 + $0x60] sm:$0xff]  ;;  %424 = vmatmul.msk.f32.vlgmr.msra.gmra.mxu0 %vm136_vm0, %v23_v6  ;;  %428 = vmatmul.msk.f32.vlgmr.msra.gmra.mxu1 %vm136_vm0, %v27_v7 }
   0xa   :  { %432 = vmatmul.msk.f32.vlgmr.msra.gmra.mxu2 %vm136_vm0, %v31_v8  ;;  %436 = vmatmul.msk.f32.vlgmr.msra.gmra.mxu3 %vm136_vm0, %v35_v9 }
   0xb   :  { %12 = vsyncpa [#allocation4], 0  ;;  %v32_v15 = vld [vmem:[%s691_s1 + $0x48] sm:$0xff]  ;;  %v48_v17 = vld [vmem:[%s692_s2 + $0x40] sm:$0xff]  ;;  %s415_s10 = sshll.u32 %s695_s5, 4  ;;  %s416_s10 = int_to_ptr.hbm [resolvable:$true] %s415_s10 }
   0xc   :  { %v36_v16 = vld [vmem:[%s691_s1 + $0x68] sm:$0xff]  ;;  %v47_v18 = vld [vmem:[%s692_s2 + $0x38] sm:$0xff]  ;;  %v46_v19 = vld [vmem:[%s692_s2 + $0x30] sm:$0xff] }
   0xd   :  { %v25_v20 = vld [vmem:[%s691_s1 + $0x10] sm:$0xff]  ;;  %v51_v24 = vld [vmem:[%s692_s2 + $0x58] sm:$0xff]  ;;  %v49_v26 = vld [vmem:[%s692_s2 + $0x48] sm:$0xff] }
   0xe   :  { %v29_v21 = vld [vmem:[%s691_s1 + $0x30] sm:$0xff]  ;;  %v26_v27 = vld [vmem:[%s691_s1 + $0x18] sm:$0xff]  ;;  %v53_v32 = vld [vmem:[%s692_s2 + $0x68] sm:$0xff] }
   0xf   :  { %83 = vperm.xlu2 %447, %v45_v10   ;;  %v33_v22 = vld [vmem:[%s691_s1 + $0x50] sm:$0xff]  ;;  %v30_v28 = vld [vmem:[%s691_s1 + $0x38] sm:$0xff]  ;;  %v52_v33 = vld [vmem:[%s692_s2 + $0x60] sm:$0xff] }
  0x10   :  { %73 = vperm.xlu1 %446, %v43_v11   ;;  %63 = vperm.xlu0 %445, %v41_v12   ;;  %v37_v23 = vld [vmem:[%s691_s1 + $0x70] sm:$0xff]  ;;  %v34_v29 = vld [vmem:[%s691_s1 + $0x58] sm:$0xff]  ;;  %v267_v34 = vld [vmem:[%s693_s3 + $0x8] sm:$0xff] }
  0x11   :  { %425 = vmatmul.msk.f32.gmra.mxu0 %vm136_vm0, %v24_v13  ;;  %429 = vmatmul.msk.f32.gmra.mxu1 %vm136_vm0, %v28_v14  ;;  %v50_v25 = vld [vmem:[%s692_s2 + $0x50] sm:$0xff]  ;;  %v38_v30 = vld [vmem:[%s691_s1 + $0x78] sm:$0xff]  ;;  %v266_v35 = vld [vmem:[%s693_s3] sm:$0xff] }
  0x12   :  { %433 = vmatmul.msk.f32.gmra.mxu2 %vm136_vm0, %v32_v15  ;;  %437 = vmatmul.msk.f32.gmra.mxu3 %vm136_vm0, %v36_v16  ;;  %v54_v31 = vld [vmem:[%s692_s2 + $0x70] sm:$0xff]  ;;  %v55_v36 = vld [vmem:[%s692_s2 + $0x78] sm:$0xff]  ;;  %v270_v37 = vld [vmem:[%s693_s3 + $0x20] sm:$0xff] }
  0x13   :  { %v269_v38 = vld [vmem:[%s693_s3 + $0x18] sm:$0xff]  ;;  %v268_v39 = vld [vmem:[%s693_s3 + $0x10] sm:$0xff]  ;;  %v271_v42 = vld [vmem:[%s693_s3 + $0x28] sm:$0xff] }
  0x14   :  { %v273_v40 = vld [vmem:[%s693_s3 + $0x38] sm:$0xff]  ;;  %v272_v41 = vld [vmem:[%s693_s3 + $0x30] sm:$0xff]  ;;  %v275_v44 = vld [vmem:[%s693_s3 + $0x48] sm:$0xff] }
  0x15   :  { %v276_v43 = vld [vmem:[%s693_s3 + $0x50] sm:$0xff]  ;;  %v274_v45 = vld [vmem:[%s693_s3 + $0x40] sm:$0xff]  ;;  %v279_v46 = vld [vmem:[%s693_s3 + $0x68] sm:$0xff] }
  0x16   :  { %v278_v47 = vld [vmem:[%s693_s3 + $0x60] sm:$0xff]  ;;  %v277_v48 = vld [vmem:[%s693_s3 + $0x58] sm:$0xff]  ;;  %v280_v51 = vld [vmem:[%s693_s3 + $0x70] sm:$0xff] }
  0x17   :  { %98 = vperm.xlu2 %447, %v48_v17   ;;  %v399_v49 = vld [vmem:[#allocation2] sm:$0x1]  ;;  %v281_v50 = vld [vmem:[%s693_s3 + $0x78] sm:$0xff]  ;;  %s475_s3 = smov [#allocation3]  }
  0x18   :  { %93 = vperm.xlu1 %446, %v47_v18   ;;  %88 = vperm.xlu0 %445, %v46_v19   ;;  %s413_s7 = sshll.u32 %s475_s3, 4  ;;  %s414_s7 = int_to_ptr.vmem [resolvable:$true] %s413_s7 }
  0x19   :  { %426 = vmatmul.msk.f32.gmra.mxu0 %vm136_vm0, %v25_v20  ;;  %430 = vmatmul.msk.f32.gmra.mxu1 %vm136_vm0, %v29_v21 }
  0x1a   :  { %434 = vmatmul.msk.f32.gmra.mxu2 %vm136_vm0, %v33_v22  ;;  %438 = vmatmul.msk.f32.gmra.mxu3 %vm136_vm0, %v37_v23 }
  0x1f   :  { %113 = vperm.xlu2 %447, %v51_v24  }
  0x20   :  { %108 = vperm.xlu1 %446, %v50_v25   ;;  %103 = vperm.xlu0 %445, %v49_v26  }
  0x21   :  { %427 = vmatmul.msk.f32.gmra.mxu0 %vm136_vm0, %v26_v27  ;;  %431 = vmatmul.msk.f32.gmra.mxu1 %vm136_vm0, %v30_v28 }
  0x22   :  { %435 = vmatmul.msk.f32.gmra.mxu2 %vm136_vm0, %v34_v29  ;;  %439 = vmatmul.msk.f32.gmra.mxu3 %vm136_vm0, %v38_v30 }
  0x27   :  { %128 = vperm.xlu2 %447, %v54_v31  }
  0x28   :  { %123 = vperm.xlu1 %446, %v53_v32   ;;  %118 = vperm.xlu0 %445, %v52_v33  }
  0x2f   :  { %289 = vperm.xlu2 %447, %v267_v34  }
  0x30   :  { %284 = vperm.xlu1 %446, %v266_v35   ;;  %133 = vperm.xlu0 %445, %v55_v36  }
  0x37   :  { %304 = vperm.xlu2 %447, %v270_v37  }
  0x38   :  { %299 = vperm.xlu1 %446, %v269_v38   ;;  %294 = vperm.xlu0 %445, %v268_v39  }
  0x3f   :  { %319 = vperm.xlu2 %447, %v273_v40  }
  0x40   :  { %314 = vperm.xlu1 %446, %v272_v41   ;;  %309 = vperm.xlu0 %445, %v271_v42  }
  0x47   :  { %334 = vperm.xlu2 %447, %v276_v43  }
  0x48   :  { %329 = vperm.xlu1 %446, %v275_v44   ;;  %324 = vperm.xlu0 %445, %v274_v45  }
  0x4f   :  { %349 = vperm.xlu2 %447, %v279_v46  }
  0x50   :  { %344 = vperm.xlu1 %446, %v278_v47   ;;  %339 = vperm.xlu0 %445, %v277_v48  }
  0x57   :  { %402 = vperm.xlu2 %447, %v399_v49  }
  0x58   :  { %359 = vperm.xlu1 %446, %v281_v50   ;;  %354 = vperm.xlu0 %445, %v280_v51  }
  0x61   :  { %v79_v52 = vpop.permute.xlu2 %78 }
  0x69   :  { %v84_v53 = vpop.permute.xlu2 %83 }
  0x71   :  { %v99_v56 = vpop.permute.xlu2 %98 }
  0x79   :  { %v672_v60 = vpop.permute.xlu2 %113 }
  0x7a   :  { %v69_v54 = vpop.permute.xlu1 %68  ;;  %v59_v55 = vpop.permute.xlu0 %58 }
  0x81   :  { %v674_v3 = vpop.permute.xlu2 %128 }
  0x82   :  { %v74_v57 = vpop.permute.xlu1 %73  ;;  %v64_v58 = vpop.permute.xlu0 %63 }
  0x86   :  { %v202_v59 = vpop.f32.mrf.mxu0  ;;  %v214_v63 = vpop.f32.mrf.mxu1 }
  0x87   :  { %v203_v10 = vadd.f32 %v202_v59, %v59_v55  ;;  %v215_v28 = vadd.f32 %v214_v63, %v79_v52 }
  0x89   :  { %v290_v9 = vpop.permute.xlu2 %289  ;;  %v250_v16 = vmax.f32 %v203_v10, 0.0  ;;  %v254_v36 = vmax.f32 %v215_v28, 0.0 }
  0x8a   :  { %v94_v61 = vpop.permute.xlu1 %93  ;;  %v89_v62 = vpop.permute.xlu0 %88 }
  0x8d   :  { %v226_v8 = vpop.f32.mrf.mxu2  ;;  %v238_v17 = vpop.f32.mrf.mxu3 }
  0x8e   :  { %v205_v0 = vpop.f32.mrf.mxu0  ;;  %v217_v4 = vpop.f32.mrf.mxu1  ;;  %v227_v50 = vadd.f32 %v226_v8, %v99_v56 }
  0x8f   :  { %v206_v11 = vadd.f32 %v205_v0, %v64_v58  ;;  %v218_v32 = vadd.f32 %v217_v4, %v84_v53 }
  0x91   :  { %v251_v18 = vmax.f32 %v206_v11, 0.0  ;;  %v305_v21 = vpop.permute.xlu2 %304  ;;  %v255_v41 = vmax.f32 %v218_v32, 0.0 }
  0x92   :  { %v109_v1 = vpop.permute.xlu1 %108  ;;  %v104_v2 = vpop.permute.xlu0 %103  ;;  %v366_v42 = vmul.f32 %v305_v21, %v254_v36 }
  0x93   :  { %v363_v24 = vmul.f32 %v290_v9, %v251_v18 }
  0x95   :  { %v229_v19 = vpop.f32.mrf.mxu2  ;;  %v241_v37 = vpop.f32.mrf.mxu3 }
  0x96   :  { %v208_v5 = vpop.f32.mrf.mxu0  ;;  %v220_v14 = vpop.f32.mrf.mxu1 }
  0x97   :  { %v209_v20 = vadd.f32 %v208_v5, %v69_v54  ;;  %v221_v38 = vadd.f32 %v220_v14, %v89_v62  ;;  %v230_v54 = vadd.f32 %v229_v19, %v104_v2 }
  0x99   :  { %v252_v25 = vmax.f32 %v209_v20, 0.0  ;;  %v320_v43 = vpop.permute.xlu2 %319  ;;  %v256_v47 = vmax.f32 %v221_v38, 0.0  ;;  %v259_v4 = vmax.f32 %v230_v54, 0.0 }
  0x9a   :  { %v676_v6 = vpop.permute.xlu1 %123  ;;  %v678_v7 = vpop.permute.xlu0 %118 }
  0x9b   :  { %v239_v8 = vadd.f32 %v238_v17, %v678_v7  ;;  %v242_v20 = vadd.f32 %v241_v37, %v676_v6 }
  0x9d   :  { %v232_v39 = vpop.f32.mrf.mxu2  ;;  %v244_v58 = vpop.f32.mrf.mxu3  ;;  %v262_v21 = vmax.f32 %v239_v8, 0.0 }
  0x9e   :  { %v211_v15 = vpop.f32.mrf.mxu0  ;;  %v223_v35 = vpop.f32.mrf.mxu1  ;;  %v233_v5 = vadd.f32 %v232_v39, %v109_v1 }
  0x9f   :  { %v212_v22 = vadd.f32 %v211_v15, %v74_v57  ;;  %v224_v44 = vadd.f32 %v223_v35, %v94_v61  ;;  %v258_v57 = vmax.f32 %v227_v50, 0.0 }
  0xa0   :  { %v260_v14 = vmax.f32 %v233_v5, 0.0 }
  0xa1   :  { %v253_v29 = vmax.f32 %v212_v22, 0.0  ;;  %v257_v51 = vmax.f32 %v224_v44, 0.0  ;;  %v335_v10 = vpop.permute.xlu2 %334 }
  0xa2   :  { %v285_v12 = vpop.permute.xlu1 %284  ;;  %v680_v13 = vpop.permute.xlu0 %133  ;;  %v372_v15 = vmul.f32 %v335_v10, %v260_v14 }
  0xa3   :  { %v362_v23 = vmul.f32 %v285_v12, %v250_v16  ;;  %v369_v59 = vmul.f32 %v320_v43, %v257_v51 }
  0xa5   :  { %v378_v30 = vadd.f32 %v363_v24, %v362_v23  ;;  %v235_v62 = vpop.f32.mrf.mxu2  ;;  %v247_v23 = vpop.f32.mrf.mxu3  ;;  %v245_v24 = vadd.f32 %v244_v58, %v674_v3 }
  0xa6   :  { %v236_v11 = vadd.f32 %v235_v62, %v672_v60  ;;  %v248_v7 = vadd.f32 %v247_v23, %v680_v13 }
  0xa7   :  { %v264_v28 = vmax.f32 %v245_v24, 0.0 }
  0xa8   :  { %v261_v16 = vmax.f32 %v236_v11, 0.0  ;;  %v265_v32 = vmax.f32 %v248_v7, 0.0 }
  0xaa   :  { %v300_v26 = vpop.permute.xlu1 %299  ;;  %v295_v27 = vpop.permute.xlu0 %294 }
  0xab   :  { %v364_v31 = vmul.f32 %v295_v27, %v252_v25  ;;  %v365_v33 = vmul.f32 %v300_v26, %v253_v29  ;;  %v350_v26 = vpop.permute.xlu2 %349  ;;  %v263_v27 = vmax.f32 %v242_v20, 0.0 }
  0xad   :  { %v379_v34 = vadd.f32 %v378_v30, %v364_v31  ;;  %v375_v29 = vmul.f32 %v350_v26, %v263_v27 }
  0xaf   :  { %v380_v40 = vadd.f32 %v379_v34, %v365_v33 }
  0xb1   :  { %v381_v49 = vadd.f32 %v380_v40, %v366_v42 }
  0xb2   :  { %v315_v45 = vpop.permute.xlu1 %314  ;;  %v310_v46 = vpop.permute.xlu0 %309 }
  0xb3   :  { %v367_v48 = vmul.f32 %v310_v46, %v255_v41  ;;  %v368_v52 = vmul.f32 %v315_v45, %v256_v47  ;;  %v403_v40 = vpop.permute.xlu2 %402 }
  0xb4   :  { %v405_v13 = vperm.slane %v403_v40, 0 }
  0xb5   :  { %v382_v53 = vadd.f32 %v381_v49, %v367_v48 }
  0xb7   :  { %v383_v55 = vadd.f32 %v382_v53, %v368_v52 }
  0xb9   :  { %v384_v9 = vadd.f32 %v383_v55, %v369_v59 }
  0xba   :  { %v330_v63 = vpop.permute.xlu1 %329  ;;  %v325_v0 = vpop.permute.xlu0 %324 }
  0xbb   :  { %v370_v61 = vmul.f32 %v325_v0, %v258_v57  ;;  %v371_v12 = vmul.f32 %v330_v63, %v259_v4 }
  0xbd   :  { %v385_v56 = vadd.f32 %v384_v9, %v370_v61 }
  0xbf   :  { %v386_v2 = vadd.f32 %v385_v56, %v371_v12 }
  0xc1   :  { %v387_v1 = vadd.f32 %v386_v2, %v372_v15 }
  0xc2   :  { %v345_v18 = vpop.permute.xlu1 %344  ;;  %v340_v19 = vpop.permute.xlu0 %339 }
  0xc3   :  { %v373_v22 = vmul.f32 %v340_v19, %v261_v16  ;;  %v374_v25 = vmul.f32 %v345_v18, %v262_v21 }
  0xc5   :  { %v388_v60 = vadd.f32 %v387_v1, %v373_v22 }
  0xc7   :  { %v389_v17 = vadd.f32 %v388_v60, %v374_v25 }
  0xc9   :  { %v390_v6 = vadd.f32 %v389_v17, %v375_v29 }
  0xca   :  { %v360_v30 = vpop.permute.xlu1 %359  ;;  %v355_v31 = vpop.permute.xlu0 %354 }
  0xcb   :  { %v376_v33 = vmul.f32 %v355_v31, %v264_v28  ;;  %v377_v34 = vmul.f32 %v360_v30, %v265_v32 }
  0xcd   :  { %v391_v35 = vadd.f32 %v390_v6, %v376_v33 }
  0xcf   :  { %v392_v36 = vadd.f32 %v391_v35, %v377_v34 }
  0xd1   :  { %v393_v37 = vrot.slane %v392_v36, 4 }
  0xd3   :  { %v394_v38 = vadd.f32 %v393_v37, %v392_v36 }
  0xd5   :  { %v395_v3 = vrot.slane %v394_v38, 2 }
  0xd7   :  { %v396_v39 = vadd.f32 %v395_v3, %v394_v38 }
  0xd9   :  { %v397_v41 = vrot.slane %v396_v39, 1 }
  0xdb   :  { %v398_v42 = vadd.f32 %v397_v41, %v396_v39 }
  0xdd   :  { %v406_v43 = vadd.f32 %v405_v13, %v398_v42 }
  0xdf   :  { %407 = vst [vmem:[#allocation3] sm:$0x1] %v406_v43 }
  0xe0   :  { %418 = dma.vmem_to_hbm [thread:$0]  %s414_s7, 16, %s416_s10, [#allocation4]  }
  0xe1   :  { %472 = dma.done.wait [#allocation4], 16  }
  0xe2   :  { %473 = vsyncadd [#allocation4], 4294967280 }
  0xe3   :  { %423 = vsyncpa [#allocation4], 1 }

</bundles_post_ra>
